<compile_context>
chip_gen: v5e
topology: v5e:2x2
jax: 0.10.0
libtpu: 0.0.40
codegen_flags: <defaults>
</compile_context>

<pallas_src>
import functools

import jax
import jax.numpy as jnp
from jax import lax
from jax.experimental import pallas as pl
from jax.experimental.pallas import tpu as pltpu


def _rmsnorm_kernel(x_ref, g_ref, o_ref, *, inv_scale, inv_eps):
    # x_ref: (tile_rows, dim), g_ref: (1, dim) f32, o_ref: (tile_rows, dim)
    x = x_ref[...].astype(jnp.float32)
    # torch: norm = ||x||_2 * dim**-0.5 ; y = x / clamp(norm, eps) * g
    #  <=>  y = x * g * min(rsqrt(sum(x^2)) * sqrt(dim), 1/eps)
    sq_sum = jnp.sum(x * x, axis=-1, keepdims=True)          # (tile_rows, 1)
    inv = jnp.minimum(lax.rsqrt(sq_sum) * inv_scale, inv_eps)  # EUP rsqrt, tiny operand
    o_ref[...] = (x * inv * g_ref[...]).astype(o_ref.dtype)


def _vmem_capacity_bytes():
    try:
        return int(pltpu.get_tpu_info().vmem_capacity_bytes)
    except Exception:
        return 64 * 1024 * 1024  # conservative (v7x per-TC VMEM)


def rmsnorm(x, g, eps=1e-8, *, tile_rows=None):
    """RMSNorm forward matching the PyTorch module semantics.

    x: (..., dim), g: (dim,)
    """
    dim = x.shape[-1]
    orig_shape = x.shape
    x2 = x.reshape(-1, dim)
    rows = x2.shape[0]

    itemsize = jnp.dtype(x.dtype).itemsize
    # Sublane packing: 8 rows/vreg for 32-bit, 16 for 16-bit, 32 for 8-bit.
    sublane = 8 if itemsize >= 4 else (16 if itemsize == 2 else 32)

    vmem_bytes = _vmem_capacity_bytes()
    if tile_rows is None:
        # Double-buffered input + output blocks in the native dtype, plus one
        # f32 working copy, must fit with headroom (g, compiler scratch, ...).
        per_row_bytes = 4 * dim * itemsize + 4 * dim
        budget = int(vmem_bytes * 0.6)
        tile_rows = max(sublane, budget // max(per_row_bytes, 1))
        tile_rows = min(tile_rows, 1024)

    # Round to sublane multiple; never larger than the (rounded-up) row count.
    tile_rows = max(sublane, (tile_rows // sublane) * sublane)
    rows_rounded = ((rows + sublane - 1) // sublane) * sublane
    tile_rows = min(tile_rows, rows_rounded)

    grid = pl.cdiv(rows, tile_rows)  # partial last block handled by Pallas

    # Explicit VMEM budget: 2x double-buffered (in + out) tiles + f32 temp + g.
    block_bytes = tile_rows * dim * itemsize
    est = 2 * 2 * block_bytes + tile_rows * dim * 4 + dim * 4 + (4 << 20)
    vmem_limit = int(min(max(est, 32 << 20), int(vmem_bytes * 0.9)))

    g2 = g.reshape(1, dim).astype(jnp.float32)

    kernel = functools.partial(
        _rmsnorm_kernel,
        inv_scale=float(dim) ** 0.5,   # 1 / (dim ** -0.5)
        inv_eps=1.0 / eps,
    )

    # TODO(synk): for dim < 128 a lane-dense repack (folding rows into lanes
    # with a segmented reduction) would avoid masked partial stores; skipped.

    out = pl.pallas_call(
        kernel,
        out_shape=jax.ShapeDtypeStruct((rows, dim), x.dtype),
        grid_spec=pltpu.PrefetchScalarGridSpec(
            num_scalar_prefetch=0,
            grid=(grid,),
            in_specs=[
                pl.BlockSpec((tile_rows, dim), lambda i: (i, 0)),
                pl.BlockSpec((1, dim), lambda i: (0, 0)),  # g stays resident
            ],
            out_specs=pl.BlockSpec((tile_rows, dim), lambda i: (i, 0)),
        ),
        compiler_params=pltpu.CompilerParams(
            dimension_semantics=("parallel",),  # lets v7x shard rows over 2 TCs
            vmem_limit_bytes=vmem_limit,
        ),
    )(x2, g2)

    return out.reshape(orig_shape)


if __name__ == "__main__":
    key = jax.random.PRNGKey(0)
    batch, seq, hidden = 2, 8, 32

    x = jax.random.normal(key, (batch, seq, hidden), dtype=jnp.float32)
    # Module init: g = ones(dim) (matches nn.Parameter(torch.ones(dim))).
    g = jnp.ones((hidden,), dtype=jnp.float32)

    y = rmsnorm(x, g, eps=1e-8)
    y = jax.block_until_ready(y)

    # Pure-JAX reference (same math as the PyTorch module).
    norm = jnp.linalg.norm(x, axis=-1, keepdims=True) * hidden ** (-0.5)
    ref = x / jnp.maximum(norm, 1e-8) * g
    assert y.shape == x.shape
    assert jnp.allclose(y, ref, atol=1e-5, rtol=1e-5), "mismatch vs reference"

    print("KERNEL_OK")
</pallas_src>

<mosaic_0001>
module attributes {stable_mosaic.version = 11 : i64} {
  func.func @_rmsnorm_kernel(%arg0: i32, %arg1: memref<16x32xf32, #tpu.memory_space<vmem>>, %arg2: memref<1x32xf32, #tpu.memory_space<vmem>>, %arg3: memref<16x32xf32, #tpu.memory_space<vmem>>) attributes {dimension_semantics = [#tpu.dimension_semantics<parallel>], iteration_bounds = array<i64: 1>, scalar_prefetch = 0 : i64, scratch_operands = 0 : i64, tpu.core_type = #tpu.core_type<tc>, window_params = [{transform_indices = @transform_0, window_bounds = array<i64: 16, 32>}, {pipeline_mode = #tpu.pipeline_mode<synchronous>, transform_indices = @transform_1, window_bounds = array<i64: 1, 32>}, {transform_indices = @transform_2, window_bounds = array<i64: 16, 32>}]} {
    %c0 = arith.constant 0 : index
    %c0_0 = arith.constant 0 : index
    %0 = vector.load %arg1[%c0, %c0_0] : memref<16x32xf32, #tpu.memory_space<vmem>>, vector<16x32xf32>
    %1 = arith.mulf %0, %0 : vector<16x32xf32>
    %cst = arith.constant dense<0.000000e+00> : vector<16xf32>
    %2 = vector.multi_reduction <add>, %1, %cst [1] : vector<16x32xf32> to vector<16xf32>
    %3 = vector.shape_cast %2 : vector<16xf32> to vector<16x1xf32>
    %4 = math.rsqrt %3 : vector<16x1xf32>
    %cst_1 = arith.constant 5.65685415 : f32
    %5 = vector.broadcast %cst_1 : f32 to vector<16x1xf32>
    %6 = arith.mulf %4, %5 : vector<16x1xf32>
    %cst_2 = arith.constant 1.000000e+08 : f32
    %7 = vector.broadcast %cst_2 : f32 to vector<16x1xf32>
    %8 = arith.minimumf %6, %7 : vector<16x1xf32>
    %9 = vector.broadcast %8 : vector<16x1xf32> to vector<16x32xf32>
    %10 = arith.mulf %0, %9 : vector<16x32xf32>
    %c0_3 = arith.constant 0 : index
    %c0_4 = arith.constant 0 : index
    %11 = vector.load %arg2[%c0_3, %c0_4] : memref<1x32xf32, #tpu.memory_space<vmem>>, vector<1x32xf32>
    %12 = vector.broadcast %11 : vector<1x32xf32> to vector<16x32xf32>
    %13 = arith.mulf %10, %12 : vector<16x32xf32>
    %c0_5 = arith.constant 0 : index
    %c0_6 = arith.constant 0 : index
    %14 = vector.load %arg3[%c0_5, %c0_6] : memref<16x32xf32, #tpu.memory_space<vmem>>, vector<16x32xf32>
    tpu.vector_store %arg3[%c0_5, %c0_6], %13 {strides = array<i32>} : memref<16x32xf32, #tpu.memory_space<vmem>>, vector<16x32xf32>,
    return
  }
  func.func @transform_0(%arg0: i32) -> (i32, i32) {
    %c0_i32 = arith.constant 0 : i32
    %c0_i32_0 = arith.constant 0 : i32
    return %arg0, %c0_i32 : i32, i32
  }
  func.func @transform_1(%arg0: i32) -> (i32, i32) {
    %c0_i32 = arith.constant 0 : i32
    %c0_i32_0 = arith.constant 0 : i32
    %c0_i32_1 = arith.constant 0 : i32
    return %c0_i32, %c0_i32_0 : i32, i32
  }
  func.func @transform_2(%arg0: i32) -> (i32, i32) {
    %c0_i32 = arith.constant 0 : i32
    %c0_i32_0 = arith.constant 0 : i32
    return %arg0, %c0_i32 : i32, i32
  }
}

</mosaic_0001>

<bundles_post_ra>
// kernel: tpu_custom_call.1
= control target key start
LH: loop header
LB: loop body
LE: loop exit
PB: predicated region body
PF: predicated region fallthrough
CT: control target
= control target key end

     0   :  { %7 = vsyncpa [#allocation3], 0  ;;  %s234_s0 = inlined_call_operand.hbm [shape: f32[16,32], index: 0, kind: input, shape index: {}]   ;;  %s235_s1 = inlined_call_operand.hbm [shape: f32[1,32], index: 1, kind: input, shape index: {}]   ;;  %s236_s2 = inlined_call_operand.hbm [shape: f32[16,32], index: 2, kind: output, shape index: {}]  }
   0x1   :  { %8 = vsyncpa [#allocation6], 0 }
   0x2   :  { %9 = vsyncpa [#allocation4], 0  ;;  %s14_s11 = sshll.u32 %s234_s0, 4  ;;  %s195_s12 = smov [#allocation2]   ;;  %s15_s11 = int_to_ptr.hbm [resolvable:$true] %s14_s11 }
   0x3   :  { %s16_s13 = sshll.u32 %s195_s12, 4  ;;  %s28_s16 = sshll.u32 %s235_s1, 4  ;;  %s17_s13 = int_to_ptr.vmem [resolvable:$true] %s16_s13  ;;  %s29_s16 = int_to_ptr.hbm [resolvable:$true] %s28_s16 }
   0x4   :  { %s196_s17 = smov 128   ;;  %s197_s18 = smov 8  }
   0x5   :  { %22 = dma.hbm_to_vmem [thread:$0]  %s15_s11, 256, %s17_s13, [#allocation3], %s196_s17, %s196_s17, %s197_s18  }
   0x6   :  { %s198_s19 = smov [#allocation5]  }
   0x7   :  { %s30_s20 = sshll.u32 %s198_s19, 4  ;;  %s31_s20 = int_to_ptr.vmem [resolvable:$true] %s30_s20 }
   0x8   :  { %33 = dma.hbm_to_vmem [thread:$0]  %s29_s16, 16, %s31_s20, [#allocation6]  }
   0x9   :  { %189 = dma.done.wait [#allocation3], 256  }
   0xa   :  { %190 = vsyncadd [#allocation3], 4294967040 }
   0xb   :  { %191 = dma.done.wait [#allocation6], 16  }
   0xc   :  { %192 = vsyncadd [#allocation6], 4294967280  ;;  %v42_v0 = vld [vmem:[#allocation2] sm:$0xff]  ;;  %vm46_vm0 = vcmask 261120   ;;  %v43_v2 = vld [vmem:[#allocation2 + $0x8] sm:$0xff]  ;;  %s199_s0 = smov [#allocation7]  }
   0xd   :  { %v44_v1 = vmul.f32 %v42_v0, %v42_v0  ;;  %v45_v4 = vmul.f32 %v43_v2, %v43_v2  ;;  %v112_v21 = vld [vmem:[#allocation5] ss:$0 sm:$0xff]  ;;  %s91_s1 = sshll.u32 %s199_s0, 4  ;;  %s93_s23 = sshll.u32 %s236_s2, 4  ;;  %s92_s1 = int_to_ptr.vmem [resolvable:$true] %s91_s1  ;;  %s94_s23 = int_to_ptr.hbm [resolvable:$true] %s93_s23 }
   0xf   :  { %v47_v3 = vsel %vm46_vm0, %v44_v1, 0.0  ;;  %v50_v5 = vsel %vm46_vm0, %v45_v4, 0.0 }
  0x10   :  { %48 = vadd.xlane.f32.xlu0 %v47_v3 }
  0x18   :  { %51 = vadd.xlane.f32.xlu0 %v50_v5 }
  0x83   :  { %v49_v6 = vpop.xlane.xlu0 %48 }
  0x84   :  { %113 = vrsqrt.f32 %v49_v6  ;;  %vm59_vm2 = vweird.f32 %v49_v6 }
  0x8a   :  { %v114_v7 = vpop.eup %113 }
  0x8b   :  { %v54_v8 = vmul.f32 %v114_v7, %v49_v6  ;;  %v52_v9 = vpop.xlane.xlu0 %51  ;;  %vm60_vm1 = vweird.f32 %v114_v7 }
  0x8c   :  { %115 = vrsqrt.f32 %v52_v9  ;;  %vm61_vm3 = vmor %vm59_vm2, %vm60_vm1  ;;  %vm69_vm5 = vweird.f32 %v52_v9 }
  0x8d   :  { %v55_v10 = vmul.f32 %v114_v7, %v54_v8 }
  0x8f   :  { %v56_v11 = vmul.f32 0.5, %v55_v10 }
  0x91   :  { %v57_v12 = vsub.f32 1.5, %v56_v11 }
  0x92   :  { %v116_v13 = vpop.eup %115 }
  0x93   :  { %v58_v14 = vmul.f32 %v114_v7, %v57_v12  ;;  %v64_v15 = vmul.f32 %v116_v13, %v52_v9  ;;  %vm70_vm4 = vweird.f32 %v116_v13 }
  0x94   :  { %vm71_vm6 = vmor %vm69_vm5, %vm70_vm4 }
  0x95   :  { %v62_v16 = vsel %vm61_vm3, %v114_v7, %v58_v14  ;;  %v65_v17 = vmul.f32 %v116_v13, %v64_v15 }
  0x96   :  { %v73_v18 = vmul.f32 5.656854, %v62_v16 }
  0x97   :  { %v66_v19 = vmul.f32 0.5, %v65_v17 }
  0x98   :  { %v75_v20 = vmin.f32 %v73_v18, 1e+08 }
  0x99   :  { %v67_v22 = vsub.f32 1.5, %v66_v19 }
  0x9a   :  { %v77_v23 = vmul.f32 %v75_v20, %v42_v0 }
  0x9b   :  { %v68_v24 = vmul.f32 %v116_v13, %v67_v22 }
  0x9c   :  { %v83_v25 = vmul.f32 %v112_v21, %v77_v23 }
  0x9d   :  { %v72_v26 = vsel %vm71_vm6, %v116_v13, %v68_v24 }
  0x9e   :  { %v74_v27 = vmul.f32 5.656854, %v72_v26  ;;  %85 = vst.msk [vmem:[#allocation7] sm:$0xff] %vm46_vm0, %v83_v25 }
  0xa0   :  { %v76_v28 = vmin.f32 %v74_v27, 1e+08 }
  0xa2   :  { %v78_v29 = vmul.f32 %v76_v28, %v43_v2 }
  0xa4   :  { %v84_v30 = vmul.f32 %v112_v21, %v78_v29 }
  0xa6   :  { %86 = vst.msk [vmem:[#allocation7 + $0x8] sm:$0xff] %vm46_vm0, %v84_v30 }
  0xa7   :  { %99 = dma.vmem_to_hbm [thread:$0]  %s92_s1, 256, %s94_s23, [#allocation4], %s196_s17, %s196_s17, %s197_s18  }
  0xa8   :  { %193 = dma.done.wait [#allocation4], 256  }
  0xa9   :  { %194 = vsyncadd [#allocation4], 4294967040 }
  0xaa   :  { %104 = vsyncpa [#allocation3], 1 }
  0xab   :  { %105 = vsyncpa [#allocation6], 1 }
  0xac   :  { %106 = vsyncpa [#allocation4], 1 }

</bundles_post_ra>
